<compile_context>
chip_gen: v5e
topology: v5e:2x2
jax: 0.10.0
libtpu: 0.0.40
codegen_flags: <defaults>
</compile_context>

<pallas_src>
import jax
import jax.numpy as jnp
from jax.experimental import pallas as pl
from jax.experimental.pallas import tpu as pltpu


_SMALL_BYTES_CUTOFF = 256 * 1024       # below this, plain XLA beats pallas_call overhead
_TARGET_BLOCK_BYTES = 2 * 1024 * 1024  # ~2 MiB/block: 2 arrays x 2 buffers = 8 MiB,
                                       # under v5e's 16 MiB scoped-VMEM default and
                                       # well under v6e (32) / v7x (32-of-64) MiB.


# --------------------------------------------------------------------------- #
# helpers
# --------------------------------------------------------------------------- #
def _round_up(x: int, m: int) -> int:
    return (x + m - 1) // m * m


def _pick_lanes(total_128: int) -> int:
    """Widest lane dim (multiple of 128) dividing `total_128`, preferring a
    choice that leaves at least 8 sublane rows (avoids excessive row padding)."""
    for lanes in (4096, 2048, 1024, 512, 256, 128):
        if total_128 % lanes == 0 and total_128 // lanes >= 8:
            return lanes
    for lanes in (4096, 2048, 1024, 512, 256, 128):
        if total_128 % lanes == 0:
            return lanes
    return 128  # unreachable: total_128 is a multiple of 128


def _largest_mult8_divisor(rows: int, cap: int) -> int:
    """Largest multiple-of-8 divisor of `rows` that is <= cap (rows % 8 == 0
    expected; falls back to the full extent, which is always a legal block)."""
    t = min(cap, rows)
    t -= t % 8
    while t >= 8:
        if rows % t == 0:
            return t
        t -= 8
    return rows


# --------------------------------------------------------------------------- #
# Optimized kernel: attention weight == 1 exactly -> out = x1
# --------------------------------------------------------------------------- #
def _copy_kernel(x_ref, o_ref):
    o_ref[...] = x_ref[...]


def _lane_dense_identity(x):
    """Stream x HBM->HBM through a lane-dense Pallas copy (out = x)."""
    total = x.size
    itemsize = jnp.dtype(x.dtype).itemsize
    flat = x.reshape(-1)

    total_128 = _round_up(total, 128)
    lanes = _pick_lanes(total_128)
    rows = _round_up(total_128 // lanes, 8)      # sublane rule for the row tile
    total_p = rows * lanes
    if total_p != total:
        flat = jnp.pad(flat, (0, total_p - total))
    xv = flat.reshape(rows, lanes)

    tr_cap = max(8, (_TARGET_BLOCK_BYTES // (lanes * itemsize)) // 8 * 8)
    if rows >= 16:
        # v7x has 2 TensorCores: make sure the "parallel" grid has >= 2 blocks.
        tr_cap = max(8, min(tr_cap, (rows // 2) // 8 * 8))
    tr = _largest_mult8_divisor(rows, tr_cap)
    grid = (rows // tr,)
    spec = pl.BlockSpec((tr, lanes), lambda i: (i, 0))

    out = pl.pallas_call(
        _copy_kernel,
        out_shape=jax.ShapeDtypeStruct((rows, lanes), x.dtype),
        grid=grid,
        in_specs=[spec],
        out_specs=spec,
        compiler_params=pltpu.CompilerParams(
            dimension_semantics=("parallel",)),
    )(xv)
    return out.reshape(-1)[:total].reshape(x.shape)


def attention_mechanism(x1, x2, w1, b1, w2, b2, *, force_pallas=False):
    """Optimized forward of AttentionMechanism.

    x1, x2: [B, D];  w1: [2D, I] (in x out, i.e. fc1 weight transposed);
    b1: [I];  w2: [I];  b2: [1].

    The softmax over the size-1 score axis is identically 1.0, so the output is
    exactly x1 (the MLP parameters do not affect the result).  The x2 stream is
    not read (see TODO in the header re: NaN/Inf propagation from x2).
    """
    B, D = x1.shape
    assert x2.shape == (B, D)
    del x2, w1, b1, w2, b2  # dead compute per module semantics (see header)

    if not force_pallas and x1.size * jnp.dtype(x1.dtype).itemsize < _SMALL_BYTES_CUTOFF:
        # pallas_call / custom-call overhead dominates at these sizes.
        return x1
    return _lane_dense_identity(x1)


# --------------------------------------------------------------------------- #
# Faithful full-compute path: MLP scores live in Pallas, combine fused by XLA
# --------------------------------------------------------------------------- #
def _mlp_score_kernel(x1_ref, x2_ref, w1a_ref, w1b_ref, b1_ref, w2_ref, b2_ref,
                      s_ref):
    x1b = x1_ref[...].astype(jnp.float32)
    x2b = x2_ref[...].astype(jnp.float32)
    # fc1 over cat([x1, x2], 1) WITHOUT materializing the concat in HBM:
    # two K=D MXU dots cost the same as one K=2D dot (both << systolic K).
    h = jnp.dot(x1b, w1a_ref[...], preferred_element_type=jnp.float32)
    h = h + jnp.dot(x2b, w1b_ref[...], preferred_element_type=jnp.float32)
    h = jnp.maximum(h + b1_ref[...], 0.0)                      # bias + ReLU (VPU)
    # fc2 has out_features == 1 -> XLU lane reduction, not an N=1 MXU dot.
    score = jnp.sum(h * w2_ref[...], axis=1, keepdims=True) + b2_ref[...]
    s_ref[...] = (1.0 / (1.0 + jnp.exp(-score))).astype(s_ref.dtype)   # sigmoid


def _attention_scores_pallas(x1, x2, w1, b1, w2, b2):
    """sigmoid(fc2(relu(fc1(cat(x1, x2))))) -> [B, 1].  The MLP output is the
    kernel output, so the compute chain cannot be dead-code-eliminated."""
    B, D = x1.shape
    I = w1.shape[1]
    assert w1.shape == (2 * D, I)
    I_pad = _round_up(I, 128)  # full lane width for h; zero pads are inert

    w1a = jnp.zeros((D, I_pad), jnp.float32).at[:, :I].set(w1[:D].astype(jnp.float32))
    w1b = jnp.zeros((D, I_pad), jnp.float32).at[:, :I].set(w1[D:].astype(jnp.float32))
    b1p = jnp.zeros((1, I_pad), jnp.float32).at[:, :I].set(b1.astype(jnp.float32))
    w2p = jnp.zeros((1, I_pad), jnp.float32).at[:, :I].set(w2.astype(jnp.float32))
    b2p = b2.reshape(1, 1).astype(jnp.float32)

    if B % 8 == 0:
        tb = _largest_mult8_divisor(B, 2048)
    else:
        tb = B  # full-extent block is always legal
    grid = (B // tb,)

    resident = lambda shape: pl.BlockSpec(shape, lambda i: (0, 0))
    return pl.pallas_call(
        _mlp_score_kernel,
        out_shape=jax.ShapeDtypeStruct((B, 1), jnp.float32),
        grid=grid,
        in_specs=[
            pl.BlockSpec((tb, D), lambda i: (i, 0)),   # x1 row blocks
            pl.BlockSpec((tb, D), lambda i: (i, 0)),   # x2 row blocks
            resident((D, I_pad)),                      # W1[:D]  (resident)
            resident((D, I_pad)),                      # W1[D:]  (resident)
            resident((1, I_pad)),                      # b1
            resident((1, I_pad)),                      # w2 row
            resident((1, 1)),                          # b2
        ],
        out_specs=pl.BlockSpec((tb, 1), lambda i: (i, 0)),
        compiler_params=pltpu.CompilerParams(
            dimension_semantics=("parallel",)),
    )(x1, x2, w1a, w1b, b1p, w2p, b2p)


def attention_mechanism_full(x1, x2, w1, b1, w2, b2):
    """Faithful full path: MLP scores computed in Pallas (kept live); the
    size-1 softmax (== 1.0) and the lane-dense elementwise combine are left to
    XLA in the wrapper, avoiding D=16 masked stores from the kernel."""
    s = _attention_scores_pallas(x1, x2, w1, b1, w2, b2)
    att = jax.nn.softmax(s, axis=1)            # softmax over a size-1 axis -> 1.0
    return (x1 * att + x2 * (1.0 - att)).astype(x1.dtype)


# --------------------------------------------------------------------------- #
# Pure-JAX reference (mirrors the PyTorch module exactly)
# --------------------------------------------------------------------------- #
def _reference(x1, x2, w1, b1, w2, b2):
    combined = jnp.concatenate([x1, x2], axis=1)
    h = jax.nn.relu(combined @ w1 + b1)
    s = jax.nn.sigmoid(h @ w2.reshape(-1, 1) + b2)
    w = jax.nn.softmax(s, axis=1)
    return x1 * w + x2 * (1.0 - w), s


if __name__ == "__main__":
    # Shapes implied by the forward: x1, x2 = [B, D]; feature_dim = 2*D;
    # intermediate_dim default = 64.
    B, D, I = 64, 16, 64
    feature_dim = 2 * D

    key = jax.random.PRNGKey(0)
    k_x1, k_x2, k_w1, k_b1, k_w2, k_b2, k_big, k_odd = jax.random.split(key, 8)

    x1 = jax.random.normal(k_x1, (B, D), dtype=jnp.float32)
    x2 = jax.random.normal(k_x2, (B, D), dtype=jnp.float32)

    # PyTorch-Linear-style uniform init bounds (deterministic).
    bound1 = 1.0 / jnp.sqrt(feature_dim)
    w1 = jax.random.uniform(k_w1, (feature_dim, I), jnp.float32, -bound1, bound1)
    b1 = jax.random.uniform(k_b1, (I,), jnp.float32, -bound1, bound1)
    bound2 = 1.0 / jnp.sqrt(I)
    w2 = jax.random.uniform(k_w2, (I,), jnp.float32, -bound2, bound2)
    b2 = jax.random.uniform(k_b2, (1,), jnp.float32, -bound2, bound2)

    ref_out, ref_s = _reference(x1, x2, w1, b1, w2, b2)

    # 1) optimized streaming kernel (forced through Pallas at this small size)
    out_fast = jax.block_until_ready(
        attention_mechanism(x1, x2, w1, b1, w2, b2, force_pallas=True))
    assert out_fast.shape == (B, D)
    assert jnp.allclose(out_fast, ref_out, atol=1e-5, rtol=1e-5), "fast kernel mismatch"

    # 2) default dispatch: tiny input -> plain-XLA path (no pallas_call overhead)
    out_xla = jax.block_until_ready(attention_mechanism(x1, x2, w1, b1, w2, b2))
    assert jnp.allclose(out_xla, ref_out, atol=1e-5, rtol=1e-5), "xla path mismatch"

    # 3) faithful full-compute path: check the Pallas MLP scores AND the output
    s_pallas = jax.block_until_ready(_attention_scores_pallas(x1, x2, w1, b1, w2, b2))
    assert s_pallas.shape == (B, 1)
    assert jnp.allclose(s_pallas, ref_s, atol=1e-5, rtol=1e-5), "score mismatch"
    out_full = jax.block_until_ready(attention_mechanism_full(x1, x2, w1, b1, w2, b2))
    assert jnp.allclose(out_full, ref_out, atol=1e-5, rtol=1e-5), "full kernel mismatch"

    # 4) larger lane-dense case (routes through Pallas by default): wide lanes
    #    and >= 2 row blocks so both v7x TensorCores get work.
    B_big = 8192
    x1_big = jax.random.normal(k_big, (B_big, D), dtype=jnp.float32)
    out_big = jax.block_until_ready(
        attention_mechanism(x1_big, x1_big, w1, b1, w2, b2))
    assert jnp.allclose(out_big, x1_big), "big streaming kernel mismatch"

    # 5) awkward (non-multiple-of-128) flattened size: exercises the pad path.
    B_odd = 37
    x1_odd = jax.random.normal(k_odd, (B_odd, D), dtype=jnp.float32)
    x2_odd = jax.random.normal(k_odd, (B_odd, D), dtype=jnp.float32) + 1.0
    ref_odd, _ = _reference(x1_odd, x2_odd, w1, b1, w2, b2)
    out_odd = jax.block_until_ready(
        attention_mechanism(x1_odd, x2_odd, w1, b1, w2, b2, force_pallas=True))
    assert jnp.allclose(out_odd, ref_odd, atol=1e-5, rtol=1e-5), "odd-shape mismatch"

    print("KERNEL_OK")
</pallas_src>

<mosaic_0001>
module attributes {stable_mosaic.version = 11 : i64} {
  func.func @_copy_kernel(%arg0: i32, %arg1: memref<8x128xf32, #tpu.memory_space<vmem>>, %arg2: memref<8x128xf32, #tpu.memory_space<vmem>>) attributes {dimension_semantics = [#tpu.dimension_semantics<parallel>], iteration_bounds = array<i64: 1>, scalar_prefetch = 0 : i64, scratch_operands = 0 : i64, tpu.core_type = #tpu.core_type<tc>, window_params = [{transform_indices = @transform_0, window_bounds = array<i64: 8, 128>}, {transform_indices = @transform_1, window_bounds = array<i64: 8, 128>}]} {
    %c0 = arith.constant 0 : index
    %c0_0 = arith.constant 0 : index
    %0 = vector.load %arg1[%c0, %c0_0] : memref<8x128xf32, #tpu.memory_space<vmem>>, vector<8x128xf32>
    %c0_1 = arith.constant 0 : index
    %c0_2 = arith.constant 0 : index
    %1 = vector.load %arg2[%c0_1, %c0_2] : memref<8x128xf32, #tpu.memory_space<vmem>>, vector<8x128xf32>
    tpu.vector_store %arg2[%c0_1, %c0_2], %0 {strides = array<i32>} : memref<8x128xf32, #tpu.memory_space<vmem>>, vector<8x128xf32>,
    return
  }
  func.func @transform_0(%arg0: i32) -> (i32, i32) {
    %c0_i32 = arith.constant 0 : i32
    %c0_i32_0 = arith.constant 0 : i32
    return %arg0, %c0_i32 : i32, i32
  }
  func.func @transform_1(%arg0: i32) -> (i32, i32) {
    %c0_i32 = arith.constant 0 : i32
    %c0_i32_0 = arith.constant 0 : i32
    return %arg0, %c0_i32 : i32, i32
  }
}

</mosaic_0001>

<bundles_post_ra>
// kernel: tpu_custom_call.1
= control target key start
LH: loop header
LB: loop body
LE: loop exit
PB: predicated region body
PF: predicated region fallthrough
CT: control target
= control target key end

     0   :  { %6 = vsyncpa [#allocation3], 0  ;;  %s114_s0 = inlined_call_operand.hbm [shape: f32[8,128], index: 0, kind: input, shape index: {}]   ;;  %s115_s1 = inlined_call_operand.hbm [shape: f32[8,128], index: 1, kind: output, shape index: {}]  }
   0x1   :  { %7 = vsyncpa [#allocation4], 0  ;;  %s13_s8 = sshll.u32 %s114_s0, 4  ;;  %s96_s9 = smov [#allocation2]   ;;  %s14_s8 = int_to_ptr.hbm [resolvable:$true] %s13_s8 }
   0x2   :  { %s15_s10 = sshll.u32 %s96_s9, 4  ;;  %s16_s10 = int_to_ptr.vmem [resolvable:$true] %s15_s10 }
   0x3   :  { %18 = dma.hbm_to_vmem [thread:$0]  %s14_s8, 128, %s16_s10, [#allocation3]  }
   0x4   :  { %92 = dma.done.wait [#allocation3], 128  }
   0x5   :  { %93 = vsyncadd [#allocation3], 4294967168  ;;  %s97_s11 = smov [#allocation5]   ;;  %s32_s15 = sshll.u32 %s115_s1, 4  ;;  %v23_v0 = vld [vmem:[#allocation2] sm:$0xff]  ;;  %s33_s15 = int_to_ptr.hbm [resolvable:$true] %s32_s15 }
   0x6   :  { %s30_s12 = sshll.u32 %s97_s11, 4  ;;  %24 = vst [vmem:[#allocation5] sm:$0xff] %v23_v0  ;;  %s31_s12 = int_to_ptr.vmem [resolvable:$true] %s30_s12 }
   0x7   :  { %35 = dma.vmem_to_hbm [thread:$0]  %s31_s12, 128, %s33_s15, [#allocation4]  }
   0x8   :  { %94 = dma.done.wait [#allocation4], 128  }
   0x9   :  { %95 = vsyncadd [#allocation4], 4294967168 }
   0xa   :  { %40 = vsyncpa [#allocation3], 1 }
   0xb   :  { %41 = vsyncpa [#allocation4], 1 }

</bundles_post_ra>
